<compile_context>
chip_gen: v7x
topology: tpu7x:2x2x1
jax: 0.10.0
libtpu: 0.0.40
codegen_flags: <defaults>
</compile_context>

<pallas_src>
import functools

import jax
import jax.numpy as jnp
from jax.experimental import pallas as pl
from jax.experimental.pallas import tpu as pltpu

_LANE = 128
_BF16_ROWS = 16            # bf16 packs 16 sublane rows per vreg
_MB = 1024 * 1024


def _round_up(n, m):
    return ((n + m - 1) // m) * m


# --------------------------------------------------------------------------
# Kernel
# --------------------------------------------------------------------------
def _actor_kernel(x_ref, w1_ref, b1_ref, w2_ref, b2_ref, w3_ref, b3_ref,
                  o_ref, *, max_action):
    # Layer 1: Linear(state_dim -> 512 padded) + ReLU.  Cast the activation
    # tile to the weight dtype so the MXU runs bf16 x bf16 with f32 accum.
    h1 = jnp.dot(x_ref[...].astype(w1_ref.dtype), w1_ref[...],
                 preferred_element_type=jnp.float32)
    h1 = jnp.maximum(h1 + b1_ref[...], 0.0)

    # Layer 2: Linear(512 -> 384 padded) + ReLU.
    h2 = jnp.dot(h1.astype(w2_ref.dtype), w2_ref[...],
                 preferred_element_type=jnp.float32)
    h2 = jnp.maximum(h2 + b2_ref[...], 0.0)

    # Layer 3: Linear(384 -> 128 padded), tanh (EUP), scale by max_action.
    h3 = jnp.dot(h2.astype(w3_ref.dtype), w3_ref[...],
                 preferred_element_type=jnp.float32)
    o_ref[...] = (max_action * jnp.tanh(h3 + b3_ref[...])).astype(o_ref.dtype)


# --------------------------------------------------------------------------
# Param preparation (pad to lane multiples, cast weights) — done once.
# --------------------------------------------------------------------------
def prepare_actor_params(params, weight_dtype=jnp.bfloat16):
    """Zero-pad feature dims to lane multiples and cast weights.

    Use weight_dtype=jnp.float32 for an exact match with the PyTorch module
    (e.g. inside TD3 training where bf16 drift would compound)."""
    w1, b1 = params["w1"], params["b1"]
    w2, b2 = params["w2"], params["b2"]
    w3, b3 = params["w3"], params["b3"]

    h1, h2, a = w1.shape[1], w2.shape[1], w3.shape[1]
    h1p = _round_up(h1, _LANE)
    h2p = _round_up(h2, _LANE)
    ap = _round_up(a, _LANE)

    w1p = jnp.pad(w1, ((0, 0), (0, h1p - h1))).astype(weight_dtype)
    w2p = jnp.pad(w2, ((0, h1p - h1), (0, h2p - h2))).astype(weight_dtype)
    w3p = jnp.pad(w3, ((0, h2p - h2), (0, ap - a))).astype(weight_dtype)

    # Biases stay f32 (VPU math is f32), as (1, dim) 2-D VMEM tiles.
    b1p = jnp.pad(b1, (0, h1p - h1)).astype(jnp.float32).reshape(1, h1p)
    b2p = jnp.pad(b2, (0, h2p - h2)).astype(jnp.float32).reshape(1, h2p)
    b3p = jnp.pad(b3, (0, ap - a)).astype(jnp.float32).reshape(1, ap)

    return {"w1": w1p, "b1": b1p, "w2": w2p, "b2": b2p, "w3": w3p, "b3": b3p,
            "action_dim": a}


# --------------------------------------------------------------------------
# Tile / VMEM heuristics
# --------------------------------------------------------------------------
def _pick_block_b(B, block_b):
    """Batch tile: multiple of 16 rows (bf16 packing), >= 2 grid steps when
    B > 16 (so v7x can shard batch tiles over both TensorCores), capped at
    block_b for VMEM safety (v5e 16 MiB scoped default)."""
    half = _round_up(max(-(-B // 2), 1), _BF16_ROWS)
    return max(_BF16_ROWS, min(block_b, half))


def _estimate_vmem_bytes(bb, S, H1, H2, A, w_itemsize, out_itemsize):
    weights = 2 * (S * H1 + H1 * H2 + H2 * A) * w_itemsize   # double-buffered
    biases = 2 * (H1 + H2 + A) * 4
    io = 2 * bb * S * 4 + 2 * bb * A * out_itemsize           # x / out tiles
    interm = bb * (H1 + H2 + A) * 4 + bb * (H1 + H2) * w_itemsize
    return weights + biases + io + interm + 2 * _MB           # slack


# --------------------------------------------------------------------------
# Wrapper
# --------------------------------------------------------------------------
def actor_forward(x, prepared, max_action, *, block_b=512,
                  out_dtype=jnp.float32, trim_output=True):
    """x: (B, state_dim) f32.  prepared: output of prepare_actor_params.

    out_dtype=jnp.bfloat16 halves the padded output write for large batches;
    trim_output=False returns the row-sliced but lane-padded (B, 128) output
    so the consumer can slice the action columns itself (skips one XLA copy
    pass over the padded buffer)."""
    w1, b1 = prepared["w1"], prepared["b1"]
    w2, b2 = prepared["w2"], prepared["b2"]
    w3, b3 = prepared["w3"], prepared["b3"]
    action_dim = prepared["action_dim"]

    B, S = x.shape
    H1, H2, A = w1.shape[1], w2.shape[1], w3.shape[1]

    bb = _pick_block_b(B, block_b)
    b_pad = _round_up(B, bb)
    if b_pad != B:
        x = jnp.pad(x, ((0, b_pad - B), (0, 0)))
    x = x.astype(jnp.float32)

    grid = (b_pad // bb,)

    # Weights/biases: same block (0, 0) every step -> DMA'd once, resident.
    def resident(shape):
        return pl.BlockSpec(shape, lambda i: (0, 0))

    # Only raise the scoped-VMEM limit when a big batch tile needs it
    # (v5e default is 16 MiB); cap below v7x's 64 MiB physical VMEM.
    est = _estimate_vmem_bytes(bb, S, H1, H2, A,
                               jnp.dtype(w1.dtype).itemsize,
                               jnp.dtype(out_dtype).itemsize)
    vmem_limit = None
    if est > 16 * _MB:
        vmem_limit = int(min(max(est + est // 4, 32 * _MB), 56 * _MB))

    kernel = functools.partial(_actor_kernel, max_action=float(max_action))

    out = pl.pallas_call(
        kernel,
        out_shape=jax.ShapeDtypeStruct((b_pad, A), out_dtype),
        grid_spec=pltpu.PrefetchScalarGridSpec(
            num_scalar_prefetch=0,
            grid=grid,
            in_specs=[
                pl.BlockSpec((bb, S), lambda i: (i, 0)),   # x tiles pipeline
                resident(w1.shape), resident(b1.shape),
                resident(w2.shape), resident(b2.shape),
                resident(w3.shape), resident(b3.shape),
            ],
            out_specs=pl.BlockSpec((bb, A), lambda i: (i, 0)),
        ),
        compiler_params=pltpu.CompilerParams(
            dimension_semantics=("parallel",),      # v7x: 2 TCs share batch
            vmem_limit_bytes=vmem_limit),
    )(x, w1, b1, w2, b2, w3, b3)

    if trim_output:
        return out[:B, :action_dim]
    return out[:B]  # lane-padded actions; consumer slices [:, :action_dim]


# --------------------------------------------------------------------------
# Reference implementations / init
# --------------------------------------------------------------------------
def init_actor_params(key, state_dim, action_dim):
    """PyTorch nn.Linear default init: U[-1/sqrt(fan_in), 1/sqrt(fan_in)]."""
    def linear(k, fan_in, fan_out):
        kw, kb = jax.random.split(k)
        bound = 1.0 / jnp.sqrt(fan_in)
        # Stored as (in, out) so the kernel computes x @ W.
        w = jax.random.uniform(kw, (fan_in, fan_out), jnp.float32, -bound, bound)
        b = jax.random.uniform(kb, (fan_out,), jnp.float32, -bound, bound)
        return w, b

    k1, k2, k3 = jax.random.split(key, 3)
    w1, b1 = linear(k1, state_dim, 400)
    w2, b2 = linear(k2, 400, 300)
    w3, b3 = linear(k3, 300, action_dim)
    return {"w1": w1, "b1": b1, "w2": w2, "b2": b2, "w3": w3, "b3": b3}


def actor_forward_ref(x, prepared, max_action):
    """Pure-JAX reference with the same padded/bf16 params (dtype-matched)."""
    w1, b1 = prepared["w1"], prepared["b1"]
    w2, b2 = prepared["w2"], prepared["b2"]
    w3, b3 = prepared["w3"], prepared["b3"]
    h = jnp.dot(x.astype(w1.dtype), w1, preferred_element_type=jnp.float32) + b1
    h = jnp.maximum(h, 0.0)
    h = jnp.dot(h.astype(w2.dtype), w2, preferred_element_type=jnp.float32) + b2
    h = jnp.maximum(h, 0.0)
    h = jnp.dot(h.astype(w3.dtype), w3, preferred_element_type=jnp.float32) + b3
    return (max_action * jnp.tanh(h))[:, :prepared["action_dim"]]


def actor_forward_ref_f32(x, params, max_action):
    """Full-f32 reference matching the original PyTorch module exactly."""
    h = jnp.maximum(x @ params["w1"] + params["b1"], 0.0)
    h = jnp.maximum(h @ params["w2"] + params["b2"], 0.0)
    return max_action * jnp.tanh(h @ params["w3"] + params["b3"])


# --------------------------------------------------------------------------
# Self-test
# --------------------------------------------------------------------------
if __name__ == "__main__":
    key = jax.random.PRNGKey(0)
    k_params, k_x1, k_x2 = jax.random.split(key, 3)

    state_dim = 16
    action_dim = 4
    max_action = 2.0

    params = init_actor_params(k_params, state_dim, action_dim)
    prepared = prepare_actor_params(params)

    # --- tiny-batch (rollout) case: batch=2 -> one 16-row tile ---
    x_small = jax.random.normal(k_x1, (2, state_dim), jnp.float32)
    out_small = jax.block_until_ready(actor_forward(x_small, prepared, max_action))
    assert out_small.shape == (2, action_dim), out_small.shape
    ref_small = actor_forward_ref(x_small, prepared, max_action)
    assert jnp.allclose(out_small, ref_small, atol=2e-3, rtol=2e-3)
    ref32_small = actor_forward_ref_f32(x_small, params, max_action)
    assert jnp.allclose(out_small, ref32_small, atol=5e-2, rtol=5e-2)

    # --- multi-step grid case: batch=300 -> >=2 batch tiles (v7x both TCs) ---
    x_big = jax.random.normal(k_x2, (300, state_dim), jnp.float32)
    out_big = jax.block_until_ready(actor_forward(x_big, prepared, max_action))
    assert out_big.shape == (300, action_dim), out_big.shape
    ref_big = actor_forward_ref(x_big, prepared, max_action)
    assert jnp.allclose(out_big, ref_big, atol=2e-3, rtol=2e-3)

    # --- low-HBM-traffic variant: bf16 output, no post-kernel column slice ---
    out_bf16 = jax.block_until_ready(
        actor_forward(x_big, prepared, max_action,
                      out_dtype=jnp.bfloat16, trim_output=False))
    assert out_bf16.shape[0] == 300 and out_bf16.dtype == jnp.bfloat16
    assert jnp.allclose(out_bf16[:, :action_dim].astype(jnp.float32),
                        ref_big, atol=3e-2, rtol=3e-2)

    print("KERNEL_OK")
</pallas_src>

<mosaic_0001>
module attributes {stable_mosaic.version = 11 : i64} {
  func.func @_actor_kernel(%arg0: i32, %arg1: memref<16x16xf32, #tpu.memory_space<vmem>>, %arg2: memref<16x512xbf16, #tpu.memory_space<vmem>>, %arg3: memref<1x512xf32, #tpu.memory_space<vmem>>, %arg4: memref<512x384xbf16, #tpu.memory_space<vmem>>, %arg5: memref<1x384xf32, #tpu.memory_space<vmem>>, %arg6: memref<384x128xbf16, #tpu.memory_space<vmem>>, %arg7: memref<1x128xf32, #tpu.memory_space<vmem>>, %arg8: memref<16x128xf32, #tpu.memory_space<vmem>>) attributes {dimension_semantics = [#tpu.dimension_semantics<parallel>], iteration_bounds = array<i64: 1>, scalar_prefetch = 0 : i64, scratch_operands = 0 : i64, tpu.core_type = #tpu.core_type<tc>, window_params = [{transform_indices = @transform_0, window_bounds = array<i64: 16, 16>}, {pipeline_mode = #tpu.pipeline_mode<synchronous>, transform_indices = @transform_1, window_bounds = array<i64: 16, 512>}, {pipeline_mode = #tpu.pipeline_mode<synchronous>, transform_indices = @transform_2, window_bounds = array<i64: 1, 512>}, {pipeline_mode = #tpu.pipeline_mode<synchronous>, transform_indices = @transform_3, window_bounds = array<i64: 512, 384>}, {pipeline_mode = #tpu.pipeline_mode<synchronous>, transform_indices = @transform_4, window_bounds = array<i64: 1, 384>}, {pipeline_mode = #tpu.pipeline_mode<synchronous>, transform_indices = @transform_5, window_bounds = array<i64: 384, 128>}, {pipeline_mode = #tpu.pipeline_mode<synchronous>, transform_indices = @transform_6, window_bounds = array<i64: 1, 128>}, {transform_indices = @transform_7, window_bounds = array<i64: 16, 128>}]} {
    %c0 = arith.constant 0 : index
    %c0_0 = arith.constant 0 : index
    %0 = vector.load %arg1[%c0, %c0_0] : memref<16x16xf32, #tpu.memory_space<vmem>>, vector<16x16xf32>
    %1 = arith.truncf %0 : vector<16x16xf32> to vector<16x16xbf16>
    %c0_1 = arith.constant 0 : index
    %c0_2 = arith.constant 0 : index
    %2 = vector.load %arg2[%c0_1, %c0_2] : memref<16x512xbf16, #tpu.memory_space<vmem>>, vector<16x512xbf16>
    %cst = arith.constant dense<0.000000e+00> : vector<16x512xf32>
    %3 = tpu.matmul %1, %2, %cst {dimension_numbers = #tpu.dot_dimension_numbers<[1], [0], [0], [1], [0, 0, 1, 1], [], []>} : vector<16x16xbf16>, vector<16x512xbf16>, vector<16x512xf32> -> vector<16x512xf32>
    %c0_3 = arith.constant 0 : index
    %c0_4 = arith.constant 0 : index
    %4 = vector.load %arg3[%c0_3, %c0_4] : memref<1x512xf32, #tpu.memory_space<vmem>>, vector<1x512xf32>
    %5 = vector.broadcast %4 : vector<1x512xf32> to vector<16x512xf32>
    %6 = arith.addf %3, %5 : vector<16x512xf32>
    %cst_5 = arith.constant 0.000000e+00 : f32
    %7 = vector.broadcast %cst_5 : f32 to vector<16x512xf32>
    %8 = arith.maximumf %6, %7 : vector<16x512xf32>
    %9 = arith.truncf %8 : vector<16x512xf32> to vector<16x512xbf16>
    %c0_6 = arith.constant 0 : index
    %c0_7 = arith.constant 0 : index
    %10 = vector.load %arg4[%c0_6, %c0_7] : memref<512x384xbf16, #tpu.memory_space<vmem>>, vector<512x384xbf16>
    %cst_8 = arith.constant dense<0.000000e+00> : vector<16x384xf32>
    %11 = tpu.matmul %9, %10, %cst_8 {dimension_numbers = #tpu.dot_dimension_numbers<[1], [0], [0], [1], [0, 0, 1, 1], [], []>} : vector<16x512xbf16>, vector<512x384xbf16>, vector<16x384xf32> -> vector<16x384xf32>
    %c0_9 = arith.constant 0 : index
    %c0_10 = arith.constant 0 : index
    %12 = vector.load %arg5[%c0_9, %c0_10] : memref<1x384xf32, #tpu.memory_space<vmem>>, vector<1x384xf32>
    %13 = vector.broadcast %12 : vector<1x384xf32> to vector<16x384xf32>
    %14 = arith.addf %11, %13 : vector<16x384xf32>
    %cst_11 = arith.constant 0.000000e+00 : f32
    %15 = vector.broadcast %cst_11 : f32 to vector<16x384xf32>
    %16 = arith.maximumf %14, %15 : vector<16x384xf32>
    %17 = arith.truncf %16 : vector<16x384xf32> to vector<16x384xbf16>
    %c0_12 = arith.constant 0 : index
    %c0_13 = arith.constant 0 : index
    %18 = vector.load %arg6[%c0_12, %c0_13] : memref<384x128xbf16, #tpu.memory_space<vmem>>, vector<384x128xbf16>
    %cst_14 = arith.constant dense<0.000000e+00> : vector<16x128xf32>
    %19 = tpu.matmul %17, %18, %cst_14 {dimension_numbers = #tpu.dot_dimension_numbers<[1], [0], [0], [1], [0, 0, 1, 1], [], []>} : vector<16x384xbf16>, vector<384x128xbf16>, vector<16x128xf32> -> vector<16x128xf32>
    %c0_15 = arith.constant 0 : index
    %c0_16 = arith.constant 0 : index
    %20 = vector.load %arg7[%c0_15, %c0_16] : memref<1x128xf32, #tpu.memory_space<vmem>>, vector<1x128xf32>
    %21 = vector.broadcast %20 : vector<1x128xf32> to vector<16x128xf32>
    %22 = arith.addf %19, %21 : vector<16x128xf32>
    %23 = math.tanh %22 : vector<16x128xf32>
    %cst_17 = arith.constant 2.000000e+00 : f32
    %24 = vector.broadcast %cst_17 : f32 to vector<16x128xf32>
    %25 = arith.mulf %24, %23 : vector<16x128xf32>
    %c0_18 = arith.constant 0 : index
    %c0_19 = arith.constant 0 : index
    %26 = vector.load %arg8[%c0_18, %c0_19] : memref<16x128xf32, #tpu.memory_space<vmem>>, vector<16x128xf32>
    tpu.vector_store %arg8[%c0_18, %c0_19], %25 {strides = array<i32>} : memref<16x128xf32, #tpu.memory_space<vmem>>, vector<16x128xf32>,
    return
  }
  func.func @transform_0(%arg0: i32) -> (i32, i32) {
    %c0_i32 = arith.constant 0 : i32
    %c0_i32_0 = arith.constant 0 : i32
    return %arg0, %c0_i32 : i32, i32
  }
  func.func @transform_1(%arg0: i32) -> (i32, i32) {
    %c0_i32 = arith.constant 0 : i32
    %c0_i32_0 = arith.constant 0 : i32
    %c0_i32_1 = arith.constant 0 : i32
    return %c0_i32, %c0_i32_0 : i32, i32
  }
  func.func @transform_2(%arg0: i32) -> (i32, i32) {
    %c0_i32 = arith.constant 0 : i32
    %c0_i32_0 = arith.constant 0 : i32
    %c0_i32_1 = arith.constant 0 : i32
    return %c0_i32, %c0_i32_0 : i32, i32
  }
  func.func @transform_3(%arg0: i32) -> (i32, i32) {
    %c0_i32 = arith.constant 0 : i32
    %c0_i32_0 = arith.constant 0 : i32
    %c0_i32_1 = arith.constant 0 : i32
    return %c0_i32, %c0_i32_0 : i32, i32
  }
  func.func @transform_4(%arg0: i32) -> (i32, i32) {
    %c0_i32 = arith.constant 0 : i32
    %c0_i32_0 = arith.constant 0 : i32
    %c0_i32_1 = arith.constant 0 : i32
    return %c0_i32, %c0_i32_0 : i32, i32
  }
  func.func @transform_5(%arg0: i32) -> (i32, i32) {
    %c0_i32 = arith.constant 0 : i32
    %c0_i32_0 = arith.constant 0 : i32
    %c0_i32_1 = arith.constant 0 : i32
    return %c0_i32, %c0_i32_0 : i32, i32
  }
  func.func @transform_6(%arg0: i32) -> (i32, i32) {
    %c0_i32 = arith.constant 0 : i32
    %c0_i32_0 = arith.constant 0 : i32
    %c0_i32_1 = arith.constant 0 : i32
    return %c0_i32, %c0_i32_0 : i32, i32
  }
  func.func @transform_7(%arg0: i32) -> (i32, i32) {
    %c0_i32 = arith.constant 0 : i32
    %c0_i32_0 = arith.constant 0 : i32
    return %arg0, %c0_i32 : i32, i32
  }
}

</mosaic_0001>

<bundles_post_ra>
// kernel: tpu_custom_call.1
= control target key start
LH: loop header
LB: loop body
LE: loop exit
PB: predicated region body
PF: predicated region fallthrough
CT: control target
= control target key end

     0   :  { %12 = vsyncpa [#allocation3], 0  ;;  %s2062_s0 = inlined_call_operand.hbm [shape: f32[16,16], index: 0, kind: input, shape index: {}]   ;;  %s2063_s1 = inlined_call_operand.hbm [shape: bf16[16,512], index: 1, kind: input, shape index: {}]   ;;  %s2064_s2 = inlined_call_operand.vmem [shape: f32[1,512], index: 2, kind: input, shape index: {}]   ;;  %s2065_s3 = inlined_call_operand.hbm [shape: bf16[512,384], index: 3, kind: input, shape index: {}]   ;;  %s2066_s4 = inlined_call_operand.vmem [shape: f32[1,384], index: 4, kind: input, shape index: {}]   ;;  %s2067_s5 = inlined_call_operand.hbm [shape: bf16[384,128], index: 5, kind: input, shape index: {}]   ;;  %s2068_s6 = inlined_call_operand.vmem [shape: f32[1,128], index: 6, kind: input, shape index: {}]   ;;  %s2069_s7 = inlined_call_operand.hbm [shape: f32[16,128], index: 7, kind: output, shape index: {}]  }
   0x1   :  { %13 = vsyncpa [#allocation6], 0 }
   0x2   :  { %14 = vsyncpa [#allocation9], 0 }
   0x3   :  { %15 = vsyncpa [#allocation4], 0  ;;  %s1900_s24 = smov [#allocation5]   ;;  %s1782_s28 = scalar_lea.hbm %s2063_s1, 512 }
   0x4   :  { %s33_s25 = sshll.u32 %s1900_s24, 4  ;;  %p1783_p0 = scmp.ne.s32.totalorder %s2063_s1, %s1782_s28  ;;  %s34_s25 = int_to_ptr.vmem [resolvable:$true] %s33_s25 }
   0x5   :  { %p1786_p1 = scmp.lt.u32.totalorder %s1782_s28, %s2063_s1 }
   0x7   :  { %p1788_p2 = pnand %p1786_p1, %p1783_p0 }
   0x9   :  { %1791 = shalt.err (!%p1788_p2)
}
   0xa   :  { %s1792_s10 = scalar_lea.vmem %s34_s25, 512  ;;  %p1797_p4 = scmp.lt.s32.totalorder %s34_s25, %s34_s25 }
   0xb   :  { %p1793_p3 = scmp.ne.s32.totalorder %s34_s25, %s1792_s10  ;;  %p1798_p5 = scmp.lt.s32.totalorder %s1792_s10, %s1792_s10 }
   0xd   :  { %p1799_p6 = por %p1798_p5, %p1797_p4 }
   0xf   :  { %p1800_p7 = pnand %p1799_p6, %p1793_p3 }
  0x11   :  { %1803 = shalt.err (!%p1800_p7)
}
  0x12   :  { %s1901_s11 = smov 256   ;;  %s1902_s12 = smov 16  }
  0x13   :  { %39 = dma.hbm_to_vmem [thread:$0]  %s2063_s1, 512, %s34_s25, [#allocation6], %s1901_s11, %s1901_s11, %s1902_s12  }
  0x14   :  { %s1903_s15 = smov [#allocation2]   ;;  %s1804_s19 = scalar_lea.hbm %s2062_s0, 256 }
  0x15   :  { %s21_s16 = sshll.u32 %s1903_s15, 4  ;;  %p1805_p8 = scmp.ne.s32.totalorder %s2062_s0, %s1804_s19  ;;  %s22_s16 = int_to_ptr.vmem [resolvable:$true] %s21_s16 }
  0x16   :  { %p1808_p9 = scmp.lt.u32.totalorder %s1804_s19, %s2062_s0 }
  0x18   :  { %p1810_p10 = pnand %p1808_p9, %p1805_p8 }
  0x1a   :  { %1813 = shalt.err (!%p1810_p10)
}
  0x1b   :  { %s1814_s24 = scalar_lea.vmem %s22_s16, 256  ;;  %p1819_p12 = scmp.lt.s32.totalorder %s22_s16, %s22_s16 }
  0x1c   :  { %p1815_p11 = scmp.ne.s32.totalorder %s22_s16, %s1814_s24  ;;  %p1820_p13 = scmp.lt.s32.totalorder %s1814_s24, %s1814_s24 }
  0x1e   :  { %p1821_p0 = por %p1820_p13, %p1819_p12 }
  0x20   :  { %p1822_p1 = pnand %p1821_p0, %p1815_p11 }
  0x22   :  { %1825 = shalt.err (!%p1822_p1)
}
  0x23   :  { %s1904_s1 = smov 128   ;;  %s1905_s25 = smov 8  }
  0x24   :  { %27 = dma.hbm_to_vmem [thread:$0]  %s2062_s0, 256, %s22_s16, [#allocation3], %s1904_s1, %s1904_s1, %s1905_s25  }
  0x25   :  { %s1906_s28 = smov [#allocation7]   ;;  %s1826_s9 = scalar_lea.hbm %s2065_s3, 12288 }
  0x26   :  { %s47_s29 = sshll.u32 %s1906_s28, 4  ;;  %p1827_p2 = scmp.ne.s32.totalorder %s2065_s3, %s1826_s9  ;;  %s48_s29 = int_to_ptr.vmem [resolvable:$true] %s47_s29 }
  0x27   :  { %p1830_p3 = scmp.lt.u32.totalorder %s1826_s9, %s2065_s3 }
  0x29   :  { %p1832_p4 = pnand %p1830_p3, %p1827_p2 }
  0x2b   :  { %1835 = shalt.err (!%p1832_p4)
}
  0x2c   :  { %s1836_s14 = scalar_lea.vmem %s48_s29, 12288  ;;  %p1841_p6 = scmp.lt.s32.totalorder %s48_s29, %s48_s29 }
  0x2d   :  { %p1837_p5 = scmp.ne.s32.totalorder %s48_s29, %s1836_s14  ;;  %p1842_p7 = scmp.lt.s32.totalorder %s1836_s14, %s1836_s14 }
  0x2f   :  { %p1843_p8 = por %p1842_p7, %p1841_p6 }
  0x31   :  { %p1844_p9 = pnand %p1843_p8, %p1837_p5 }
  0x33   :  { %1847 = shalt.err (!%p1844_p9)
}
  0x34   :  { %s1907_s0 = smov 192   ;;  %s1908_s15 = smov 12  }
  0x35   :  { %53 = dma.hbm_to_vmem [thread:$0]  %s2065_s3, 12288, %s48_s29, [#allocation6], %s1907_s0, %s1907_s0, %s1908_s15  }
  0x36   :  { %s1909_s18 = smov [#allocation8]   ;;  %s1848_s22 = scalar_lea.hbm %s2067_s5, 3072 }
  0x37   :  { %s61_s19 = sshll.u32 %s1909_s18, 4  ;;  %p1849_p10 = scmp.ne.s32.totalorder %s2067_s5, %s1848_s22  ;;  %s62_s19 = int_to_ptr.vmem [resolvable:$true] %s61_s19 }
  0x38   :  { %p1852_p11 = scmp.lt.u32.totalorder %s1848_s22, %s2067_s5 }
  0x3a   :  { %p1854_p12 = pnand %p1852_p11, %p1849_p10 }
  0x3c   :  { %1857 = shalt.err (!%p1854_p12)
}
  0x3d   :  { %s1858_s28 = scalar_lea.vmem %s62_s19, 3072  ;;  %p1863_p0 = scmp.lt.s32.totalorder %s62_s19, %s62_s19 }
  0x3e   :  { %p1859_p13 = scmp.ne.s32.totalorder %s62_s19, %s1858_s28  ;;  %p1864_p1 = scmp.lt.s32.totalorder %s1858_s28, %s1858_s28 }
  0x40   :  { %p1865_p2 = por %p1864_p1, %p1863_p0 }
  0x42   :  { %p1866_p3 = pnand %p1865_p2, %p1859_p13 }
  0x44   :  { %1869 = shalt.err (!%p1866_p3)
}
  0x45   :  { %s1910_s3 = smov 64   ;;  %s1911_s29 = smov 4  }
  0x46   :  { %67 = dma.hbm_to_vmem [thread:$0]  %s2067_s5, 3072, %s62_s19, [#allocation9], %s1910_s3, %s1910_s3, %s1911_s29  }
  0x47   :  { %1892 = dma.done.wait [#allocation3], 256  }
  0x48   :  { %1893 = vsyncadd [#allocation3], 4294967040 }
  0x49   :  { %1894 = dma.done.wait [#allocation6], 12800  }
  0x4a   :  { %1895 = vsyncadd [#allocation6], 4294954496 }
  0x4b   :  { %1896 = dma.done.wait [#allocation9], 3072  }
  0x4c   :  { %1897 = vsyncadd [#allocation9], 4294964224  ;;  %v1912_v0 = vmov 0   ;;  %v1620_v1 = vld [vmem:[#allocation5 + $0x4] ss:$16 sps:$4 sm:$0xff]   ;;  %v84_v4 = vld [vmem:[#allocation2 + $0x8] sm:$0xff]  ;;  %v92_v58 = vlaneseq }
  0x4d   :  { %168 = vmatprep.mubr.bf16.mxu0 %v1912_v0  ;;  %211 = vmatprep.mubr.bf16.mxu1 %v1912_v0  ;;  %v1622_v2 = vld [vmem:[#allocation5] ss:$16 sps:$4 sm:$0xff]   ;;  %v1623_v6 = vld [vmem:[#allocation5 + $0xc] ss:$16 sps:$4 sm:$0xff]   ;;  %vm132_vm0 = vcmask 130048   ;;  %vm1914_vm1 = vmmov 0  }
  0x4e   :  { %v83_v3 = vld [vmem:[#allocation2] sm:$0xff]  ;;  %136 = vmatprep.subr.bf16.mxu0 %v1620_v1  ;;  %v1625_v7 = vld [vmem:[#allocation5 + $0x8] ss:$16 sps:$4 sm:$0xff]   ;;  %179 = vmatprep.subr.bf16.mxu1 %v1623_v6  ;;  %v1626_v8 = vld [vmem:[#allocation7] ss:$12 sps:$4 sm:$0xff]   ;;  %v2007_v59 = vshrl.u32 %v92_v58, 7 }
  0x4f   :  { %v85_v5 = vpack.c.bf16 %v84_v4, %v83_v3  ;;  %137 = vmatpush1.bf16.msra.mxu0 %v1622_v2  ;;  %v1628_v9 = vld [vmem:[#allocation7 + $0x4] ss:$12 sps:$4 sm:$0xff]   ;;  %180 = vmatpush1.bf16.msra.mxu1 %v1625_v7  ;;  %v1631_v10 = vld [vmem:[#allocation7 + $0x1c] ss:$12 sps:$4 sm:$0xff]   ;;  %v1634_v12 = vld [vmem:[#allocation7 + $0x34] ss:$12 sps:$4 sm:$0xff]  }
  0x50   :  { %891 = vmatprep.subr.bf16.mxu0 %v1628_v9  ;;  %v1629_v11 = vld [vmem:[#allocation7 + $0x18] ss:$12 sps:$4 sm:$0xff]   ;;  %v1632_v13 = vld [vmem:[#allocation7 + $0x30] ss:$12 sps:$4 sm:$0xff]   ;;  %v1635_v15 = vld [vmem:[#allocation7 + $0x48] ss:$12 sps:$4 sm:$0xff]  }
  0x51   :  { %v1637_v14 = vld [vmem:[#allocation7 + $0x4c] ss:$12 sps:$4 sm:$0xff]   ;;  %v1640_v16 = vld [vmem:[#allocation7 + $0x64] ss:$12 sps:$4 sm:$0xff]   ;;  %v1653_v17 = vld [vmem:[#allocation7 + $0xc8] ss:$12 sps:$4 sm:$0xff]  }
  0x52   :  { %1378 = vmatmul.mubr.msk.bf16.vlgmr.msra.gmra.mrb[0].mxu0 %vm132_vm0, %v85_v5  ;;  %1379 = vmatmul.mubr.msk.bf16.vlgmr.msra.gmra.mrb[0].mxu1 %vm132_vm0, %v85_v5  ;;  %v1654_v18 = vld [vmem:[#allocation7 + $0x8] ss:$12 sps:$4 sm:$0xff]   ;;  %v1638_v19 = vld [vmem:[#allocation7 + $0x60] ss:$12 sps:$4 sm:$0xff]   ;;  %v1641_v23 = vld [vmem:[#allocation7 + $0x78] ss:$12 sps:$4 sm:$0xff]  }
  0x53   :  { %892 = vmatpush1.bf16.msra.mxu0 %v1626_v8  ;;  %v1643_v20 = vld [vmem:[#allocation7 + $0x7c] ss:$12 sps:$4 sm:$0xff]   ;;  %1501 = vmatprep.subr.bf16.mxu1 %v1653_v17  ;;  %v1658_v21 = vld [vmem:[#allocation7 + $0xe0] ss:$12 sps:$4 sm:$0xff]   ;;  %v1663_v24 = vld [vmem:[#allocation7 + $0xf8] ss:$12 sps:$4 sm:$0xff]  }
  0x54   :  { %893 = vmatprep.subr.bf16.mxu0 %v1631_v10  ;;  %1502 = vmatpush3.bf16.msra.mxu1 %v1654_v18  ;;  %v1659_v22 = vld [vmem:[#allocation7 + $0x20] ss:$12 sps:$4 sm:$0xff]   ;;  %v1664_v25 = vld [vmem:[#allocation7 + $0x38] ss:$12 sps:$4 sm:$0xff]   ;;  %v1644_v27 = vld [vmem:[#allocation7 + $0x90] ss:$12 sps:$4 sm:$0xff]  }
  0x55   :  { %1503 = vmatprep.subr.bf16.mxu1 %v1658_v21  ;;  %v1646_v26 = vld [vmem:[#allocation7 + $0x94] ss:$12 sps:$4 sm:$0xff]   ;;  %v1668_v28 = vld [vmem:[#allocation7 + $0x110] ss:$12 sps:$4 sm:$0xff]   ;;  %v1649_v30 = vld [vmem:[#allocation7 + $0xac] ss:$12 sps:$4 sm:$0xff]  }
  0x56   :  { %v1669_v29 = vld [vmem:[#allocation7 + $0x50] ss:$12 sps:$4 sm:$0xff]   ;;  %v1673_v31 = vld [vmem:[#allocation7 + $0x128] ss:$12 sps:$4 sm:$0xff]   ;;  %v1678_v35 = vld [vmem:[#allocation7 + $0x140] ss:$12 sps:$4 sm:$0xff]  }
  0x57   :  { %894 = vmatpush1.bf16.msra.mxu0 %v1629_v11  ;;  %v1647_v32 = vld [vmem:[#allocation7 + $0xa8] ss:$12 sps:$4 sm:$0xff]   ;;  %v1652_v33 = vld [vmem:[#allocation7 + $0xc4] ss:$12 sps:$4 sm:$0xff]   ;;  %v1650_v36 = vld [vmem:[#allocation7 + $0xc0] ss:$12 sps:$4 sm:$0xff]  }
  0x58   :  { %895 = vmatprep.subr.bf16.mxu0 %v1634_v12  ;;  %1504 = vmatpush3.bf16.msra.mxu1 %v1659_v22  ;;  %v1674_v34 = vld [vmem:[#allocation7 + $0x68] ss:$12 sps:$4 sm:$0xff]   ;;  %v1679_v38 = vld [vmem:[#allocation7 + $0x80] ss:$12 sps:$4 sm:$0xff]   ;;  %v1655_v39 = vld [vmem:[#allocation7 + $0xd8] ss:$12 sps:$4 sm:$0xff]  }
  0x59   :  { %1505 = vmatprep.subr.bf16.mxu1 %v1663_v24  ;;  %v1657_v37 = vld [vmem:[#allocation7 + $0xdc] ss:$12 sps:$4 sm:$0xff]   ;;  %v1662_v40 = vld [vmem:[#allocation7 + $0xf4] ss:$12 sps:$4 sm:$0xff]   ;;  %v1667_v42 = vld [vmem:[#allocation7 + $0x10c] ss:$12 sps:$4 sm:$0xff]  }
  0x5a   :  { %v1660_v41 = vld [vmem:[#allocation7 + $0xf0] ss:$12 sps:$4 sm:$0xff]   ;;  %v1665_v43 = vld [vmem:[#allocation7 + $0x108] ss:$12 sps:$4 sm:$0xff]   ;;  %v1670_v45 = vld [vmem:[#allocation7 + $0x120] ss:$12 sps:$4 sm:$0xff]  }
  0x5b   :  { %896 = vmatpush1.bf16.msra.mxu0 %v1632_v13  ;;  %v1672_v44 = vld [vmem:[#allocation7 + $0x124] ss:$12 sps:$4 sm:$0xff]   ;;  %v1677_v46 = vld [vmem:[#allocation7 + $0x13c] ss:$12 sps:$4 sm:$0xff]   ;;  %v1682_v48 = vld [vmem:[#allocation7 + $0x154] ss:$12 sps:$4 sm:$0xff]  }
  0x5c   :  { %897 = vmatprep.subr.bf16.mxu0 %v1637_v14  ;;  %1506 = vmatpush3.bf16.msra.mxu1 %v1664_v25  ;;  %v1675_v47 = vld [vmem:[#allocation7 + $0x138] ss:$12 sps:$4 sm:$0xff]   ;;  %v1680_v50 = vld [vmem:[#allocation7 + $0x150] ss:$12 sps:$4 sm:$0xff]   ;;  %v1685_v54 = vld [vmem:[#allocation7 + $0x168] ss:$12 sps:$4 sm:$0xff]  }
  0x5d   :  { %1507 = vmatprep.subr.bf16.mxu1 %v1668_v28  ;;  %v1683_v49 = vld [vmem:[#allocation7 + $0x158] ss:$12 sps:$4 sm:$0xff]   ;;  %v1688_v53 = vld [vmem:[#allocation7 + $0x170] ss:$12 sps:$4 sm:$0xff]   ;;  %v1693_v57 = vld [vmem:[#allocation7 + $0x248] ss:$12 sps:$4 sm:$0xff]  }
  0x5e   :  { %v1684_v51 = vld [vmem:[#allocation7 + $0x98] ss:$12 sps:$4 sm:$0xff]   ;;  %v1689_v55 = vld [vmem:[#allocation7 + $0xb0] ss:$12 sps:$4 sm:$0xff]   ;;  %v94_v60 = vsub.s32 0, %v2007_v59  ;;  %v98_v62 = vsub.s32 1, %v2007_v59 }
  0x5f   :  { %898 = vmatpush1.bf16.msra.mxu0 %v1635_v15  ;;  %v1687_v52 = vld [vmem:[#allocation7 + $0x16c] ss:$12 sps:$4 sm:$0xff]   ;;  %v1692_v56 = vld [vmem:[#allocation7 + $0x184] ss:$12 sps:$4 sm:$0xff]   ;;  %v102_v63 = vsub.s32 2, %v2007_v59  ;;  %v106_v0 = vsub.s32 3, %v2007_v59 }
  0x60   :  { %899 = vmatprep.subr.bf16.mxu0 %v1640_v16  ;;  %1508 = vmatpush3.bf16.msra.mxu1 %v1669_v29  ;;  %v90_v61 = vld [vmem:[%s2064_s2] sm:$0xf]  ;;  %v1724_v58 = vld [vmem:[#allocation7 + $0x218] ss:$12 sps:$4 sm:$0xff]   ;;  %v1771_v59 = vld [vmem:[#allocation8 + $0x88] sm:$0xff]   ;;  %s1915_s12 = smov [#allocation10]  }
  0x61   :  { %1509 = vmatprep.subr.bf16.mxu1 %v1673_v31  ;;  %v95_v1 = vrot.slane %v90_v61, %v94_v60  ;;  %v99_v2 = vrot.slane %v90_v61, %v98_v62  ;;  %v103_v3 = vrot.slane %v90_v61, %v102_v63  ;;  %v107_v5 = vrot.slane %v90_v61, %v106_v0  ;;  %v1694_v31 = vld [vmem:[#allocation7 + $0x188] ss:$12 sps:$4 sm:$0xff]   ;;  %v1727_v61 = vld [vmem:[#allocation7 + $0x22c] ss:$12 sps:$4 sm:$0xff]   ;;  %v1728_v0 = vld [vmem:[#allocation7 + $0x2f0] ss:$12 sps:$4 sm:$0xff]  }
  0x62   :  { %s1360_s13 = sshll.u32 %s1915_s12, 4  ;;  %s1361_s13 = int_to_ptr.vmem [resolvable:$true] %s1360_s13 }
  0x63   :  { %900 = vmatpush1.bf16.msra.mxu0 %v1638_v19  ;;  %p1875_p5 = scmp.lt.s32.totalorder %s1361_s13, %s1361_s13 }
  0x64   :  { %901 = vmatprep.subr.bf16.mxu0 %v1643_v20  ;;  %1510 = vmatpush3.bf16.msra.mxu1 %v1674_v34  ;;  %v1698_v34 = vld [vmem:[#allocation7 + $0x260] ss:$12 sps:$4 sm:$0xff]  }
  0x65   :  { %1511 = vmatprep.subr.bf16.mxu1 %v1678_v35 }
  0x67   :  { %902 = vmatpush1.bf16.msra.mxu0 %v1641_v23 }
  0x68   :  { %903 = vmatprep.subr.bf16.mxu0 %v1646_v26  ;;  %1512 = vmatpush3.bf16.msra.mxu1 %v1679_v38  ;;  %v1699_v38 = vld [vmem:[#allocation7 + $0x1a0] ss:$12 sps:$4 sm:$0xff]  }
  0x69   :  { %1513 = vmatprep.subr.bf16.mxu1 %v1683_v49  ;;  %v1710_v49 = vld [vmem:[#allocation7 + $0x1e0] ss:$12 sps:$4 sm:$0xff]  }
  0x6b   :  { %904 = vmatpush1.bf16.msra.mxu0 %v1644_v27 }
  0x6c   :  { %905 = vmatprep.subr.bf16.mxu0 %v1649_v30  ;;  %1514 = vmatpush3.bf16.msra.mxu1 %v1684_v51  ;;  %v1690_v30 = vld [vmem:[#allocation7 + $0x180] ss:$12 sps:$4 sm:$0xff]   ;;  %v1717_v51 = vld [vmem:[#allocation7 + $0x1fc] ss:$12 sps:$4 sm:$0xff]  }
  0x6d   :  { %1515 = vmatprep.subr.bf16.mxu1 %v1688_v53  ;;  %v1715_v53 = vld [vmem:[#allocation7 + $0x1f8] ss:$12 sps:$4 sm:$0xff]  }
  0x6f   :  { %906 = vmatpush1.bf16.msra.mxu0 %v1647_v32 }
  0x70   :  { %907 = vmatprep.subr.bf16.mxu0 %v1652_v33  ;;  %1516 = vmatpush3.bf16.msra.mxu1 %v1689_v55  ;;  %v1697_v33 = vld [vmem:[#allocation7 + $0x19c] ss:$12 sps:$4 sm:$0xff]   ;;  %v1722_v55 = vld [vmem:[#allocation7 + $0x214] ss:$12 sps:$4 sm:$0xff]  }
  0x71   :  { %1523 = vmatprep.subr.bf16.mxu1 %v1693_v57  ;;  %v1720_v57 = vld [vmem:[#allocation7 + $0x210] ss:$12 sps:$4 sm:$0xff]  }
  0x73   :  { %908 = vmatpush1.bf16.msra.mxu0 %v1650_v36 }
  0x74   :  { %909 = vmatprep.subr.bf16.mxu0 %v1657_v37  ;;  %v1695_v37 = vld [vmem:[#allocation7 + $0x198] ss:$12 sps:$4 sm:$0xff]  }
  0x77   :  { %910 = vmatpush1.bf16.msra.mxu0 %v1655_v39  ;;  %v1702_v39 = vld [vmem:[#allocation7 + $0x1b4] ss:$12 sps:$4 sm:$0xff]  }
  0x78   :  { %911 = vmatprep.subr.bf16.mxu0 %v1662_v40  ;;  %v1703_v40 = vld [vmem:[#allocation7 + $0x278] ss:$12 sps:$4 sm:$0xff]  }
  0x7b   :  { %912 = vmatpush1.bf16.msra.mxu0 %v1660_v41  ;;  %v1700_v41 = vld [vmem:[#allocation7 + $0x1b0] ss:$12 sps:$4 sm:$0xff]  }
  0x7c   :  { %913 = vmatprep.subr.bf16.mxu0 %v1667_v42  ;;  %v1704_v42 = vld [vmem:[#allocation7 + $0x1b8] ss:$12 sps:$4 sm:$0xff]  }
  0x7f   :  { %914 = vmatpush1.bf16.msra.mxu0 %v1665_v43  ;;  %v1707_v43 = vld [vmem:[#allocation7 + $0x1cc] ss:$12 sps:$4 sm:$0xff]  }
  0x80   :  { %915 = vmatprep.subr.bf16.mxu0 %v1672_v44  ;;  %v1708_v44 = vld [vmem:[#allocation7 + $0x290] ss:$12 sps:$4 sm:$0xff]  }
  0x83   :  { %916 = vmatpush1.bf16.msra.mxu0 %v1670_v45  ;;  %v1705_v45 = vld [vmem:[#allocation7 + $0x1c8] ss:$12 sps:$4 sm:$0xff]  }
  0x84   :  { %917 = vmatprep.subr.bf16.mxu0 %v1677_v46  ;;  %v1709_v46 = vld [vmem:[#allocation7 + $0x1d0] ss:$12 sps:$4 sm:$0xff]  }
  0x87   :  { %918 = vmatpush1.bf16.msra.mxu0 %v1675_v47  ;;  %v1712_v47 = vld [vmem:[#allocation7 + $0x1e4] ss:$12 sps:$4 sm:$0xff]  }
  0x88   :  { %919 = vmatprep.subr.bf16.mxu0 %v1682_v48  ;;  %v1713_v48 = vld [vmem:[#allocation7 + $0x2a8] ss:$12 sps:$4 sm:$0xff]  }
  0x8b   :  { %920 = vmatpush1.bf16.msra.mxu0 %v1680_v50  ;;  %v1714_v50 = vld [vmem:[#allocation7 + $0x1e8] ss:$12 sps:$4 sm:$0xff]  }
  0x8c   :  { %921 = vmatprep.subr.bf16.mxu0 %v1687_v52  ;;  %v1718_v52 = vld [vmem:[#allocation7 + $0x2c0] ss:$12 sps:$4 sm:$0xff]  }
  0x8f   :  { %922 = vmatpush1.bf16.msra.mxu0 %v1685_v54  ;;  %v1719_v54 = vld [vmem:[#allocation7 + $0x200] ss:$12 sps:$4 sm:$0xff]  }
  0x90   :  { %934 = vmatprep.subr.bf16.mxu0 %v1692_v56  ;;  %v1723_v56 = vld [vmem:[#allocation7 + $0x2d8] ss:$12 sps:$4 sm:$0xff]  }
 0x125   :  { %v170_v4 = vpop.f32.mrb[0].mxu0  ;;  %v213_v10 = vpop.f32.mrb[0].mxu1 }
 0x126   :  { %v171_v6 = vadd.f32 %v170_v4, %v95_v1  ;;  %v172_v7 = vpop.f32.mrb[1].mxu0  ;;  %v214_v13 = vadd.f32 %v213_v10, %v103_v3  ;;  %v215_v14 = vpop.f32.mrb[1].mxu1  ;;  %v1730_v4 = vld [vmem:[#allocation7 + $0x240] ss:$12 sps:$4 sm:$0xff]   ;;  %v1739_v10 = vld [vmem:[#allocation7 + $0x288] ss:$12 sps:$4 sm:$0xff]  }
 0x127   :  { %v173_v8 = vadd.f32 %v172_v7, %v99_v2  ;;  %v174_v9 = vpop.f32.mrb[2].mxu0  ;;  %v216_v16 = vadd.f32 %v215_v14, %v107_v5  ;;  %v217_v17 = vpop.f32.mrb[2].mxu1  ;;  %v1738_v7 = vld [vmem:[#allocation7 + $0x274] ss:$12 sps:$4 sm:$0xff]   ;;  %v1745_v14 = vld [vmem:[#allocation7 + $0x2b8] ss:$12 sps:$4 sm:$0xff]  }
 0x128   :  { %v175_v11 = vadd.f32 %v174_v9, %v95_v1  ;;  %v176_v12 = vpop.f32.mrb[3].mxu0  ;;  %v222_v18 = vmax.f32 %v171_v6, 0.0  ;;  %v224_v20 = vmax.f32 %v214_v13, 0.0  ;;  %v218_v21 = vadd.f32 %v217_v17, %v103_v3  ;;  %v219_v22 = vpop.f32.mrb[3].mxu1  ;;  %v1725_v1 = vld [vmem:[#allocation7 + $0x228] ss:$12 sps:$4 sm:$0xff]  }
 0x129   :  { %v177_v15 = vadd.f32 %v176_v12, %v99_v2  ;;  %v223_v23 = vmax.f32 %v173_v8, 0.0  ;;  %v225_v25 = vmax.f32 %v216_v16, 0.0  ;;  %v220_v26 = vadd.f32 %v219_v22, %v107_v5  ;;  %v1729_v2 = vld [vmem:[#allocation7 + $0x230] ss:$12 sps:$4 sm:$0xff]   ;;  %v1733_v6 = vld [vmem:[#allocation7 + $0x258] ss:$12 sps:$4 sm:$0xff]  }
 0x12a   :  { %v226_v19 = vmax.f32 %v175_v11, 0.0  ;;  %v228_v28 = vmax.f32 %v218_v21, 0.0  ;;  %v1732_v3 = vld [vmem:[#allocation7 + $0x244] ss:$12 sps:$4 sm:$0xff]   ;;  %v1735_v5 = vld [vmem:[#allocation7 + $0x25c] ss:$12 sps:$4 sm:$0xff]  }
 0x12b   :  { %v227_v24 = vmax.f32 %v177_v15, 0.0  ;;  %v229_v32 = vmax.f32 %v220_v26, 0.0  ;;  %v1736_v8 = vld [vmem:[#allocation7 + $0x270] ss:$12 sps:$4 sm:$0xff]   ;;  %v1741_v9 = vld [vmem:[#allocation7 + $0x28c] ss:$12 sps:$4 sm:$0xff]  }
 0x12c   :  { %v230_v27 = vpack.c.bf16 %v226_v19, %v222_v18  ;;  %v2022_v35 = vpack.c.bf16 %v228_v28, %v224_v20  ;;  %v1744_v11 = vld [vmem:[#allocation7 + $0x2a4] ss:$12 sps:$4 sm:$0xff]   ;;  %v1742_v12 = vld [vmem:[#allocation7 + $0x2a0] ss:$12 sps:$4 sm:$0xff]   ;;  %v1747_v13 = vld [vmem:[#allocation7 + $0x2bc] ss:$12 sps:$4 sm:$0xff]  }
 0x12d   :  { %v231_v29 = vpack.c.bf16 %v227_v24, %v223_v23  ;;  %v233_v36 = vpack.c.bf16 %v229_v32, %v225_v25  ;;  %v1750_v15 = vld [vmem:[#allocation7 + $0x2d4] ss:$12 sps:$4 sm:$0xff]   ;;  %v1748_v16 = vld [vmem:[#allocation7 + $0x2d0] ss:$12 sps:$4 sm:$0xff]   ;;  %v1753_v17 = vld [vmem:[#allocation7 + $0x2ec] ss:$12 sps:$4 sm:$0xff]  }
 0x12e   :  { %v1751_v18 = vld [vmem:[#allocation7 + $0x2e8] ss:$12 sps:$4 sm:$0xff]   ;;  %v1754_v19 = vld [vmem:[#allocation8 + $0x40] sm:$0xff]   ;;  %v1760_v25 = vld [vmem:[#allocation8 + $0x58] sm:$0xff]  }
 0x12f   :  { %923 = vmatprep.mubr.bf16.mxu0 %v231_v29  ;;  %1009 = vmatprep.mubr.bf16.mxu1 %v231_v29  ;;  %v1755_v20 = vld [vmem:[#allocation8] sm:$0xff]   ;;  %v1756_v21 = vld [vmem:[#allocation8 + $0x48] sm:$0xff]   ;;  %v1758_v23 = vld [vmem:[#allocation8 + $0x50] sm:$0xff]  }
 0x130   :  { %924 = vmatmul.mubr.bf16.vlgmr.msra.gmra.mrb[4].mxu0 %v230_v27  ;;  %1010 = vmatmul.mubr.bf16.vlgmr.msra.gmra.mrb[4].mxu1 %v230_v27  ;;  %v1757_v22 = vld [vmem:[#allocation8 + $0x8] sm:$0xff]   ;;  %v1759_v24 = vld [vmem:[#allocation8 + $0x10] sm:$0xff]   ;;  %v1761_v26 = vld [vmem:[#allocation8 + $0x18] sm:$0xff]  }
 0x131   :  { %935 = vmatpush1.bf16.msra.mxu0 %v1690_v30  ;;  %1524 = vmatpush3.bf16.msra.mxu1 %v1694_v31  ;;  %v1762_v27 = vld [vmem:[#allocation8 + $0x60] sm:$0xff]   ;;  %v1764_v29 = vld [vmem:[#allocation8 + $0x68] sm:$0xff]   ;;  %v1766_v31 = vld [vmem:[#allocation8 + $0x70] sm:$0xff]  }
 0x132   :  { %936 = vmatprep.subr.bf16.mxu0 %v1697_v33  ;;  %1525 = vmatprep.subr.bf16.mxu1 %v1698_v34  ;;  %v1763_v28 = vld [vmem:[#allocation8 + $0x20] sm:$0xff]   ;;  %v1765_v30 = vld [vmem:[#allocation8 + $0x28] sm:$0xff]   ;;  %v1767_v32 = vld [vmem:[#allocation8 + $0x30] sm:$0xff]  }
 0x133   :  { %1050 = vmatprep.mubr.bf16.mxu1 %v233_v36  ;;  %966 = vmatprep.mubr.bf16.mxu0 %v233_v36  ;;  %v1768_v33 = vld [vmem:[#allocation8 + $0x78] sm:$0xff]  }
 0x134   :  { %v1769_v34 = vld [vmem:[#allocation8 + $0x38] sm:$0xff]  }
 0x135   :  { %937 = vmatpush1.bf16.msra.mxu0 %v1695_v37  ;;  %1526 = vmatpush3.bf16.msra.mxu1 %v1699_v38 }
 0x136   :  { %938 = vmatprep.subr.bf16.mxu0 %v1702_v39  ;;  %1527 = vmatprep.subr.bf16.mxu1 %v1703_v40 }
 0x139   :  { %939 = vmatpush1.bf16.msra.mxu0 %v1700_v41  ;;  %1528 = vmatpush3.bf16.msra.mxu1 %v1704_v42  ;;  %v362_v42 = vld [vmem:[%s2066_s4] sm:$0x7] }
 0x13a   :  { %940 = vmatprep.subr.bf16.mxu0 %v1707_v43  ;;  %1529 = vmatprep.subr.bf16.mxu1 %v1708_v44  ;;  %v375_v43 = vrot.slane %v362_v42, %v102_v63 }
 0x13d   :  { %941 = vmatpush1.bf16.msra.mxu0 %v1705_v45  ;;  %1530 = vmatpush3.bf16.msra.mxu1 %v1709_v46 }
 0x13e   :  { %942 = vmatprep.subr.bf16.mxu0 %v1712_v47  ;;  %1531 = vmatprep.subr.bf16.mxu1 %v1713_v48 }
 0x141   :  { %943 = vmatpush1.bf16.msra.mxu0 %v1710_v49  ;;  %1532 = vmatpush3.bf16.msra.mxu1 %v1714_v50 }
 0x142   :  { %944 = vmatprep.subr.bf16.mxu0 %v1717_v51  ;;  %1533 = vmatprep.subr.bf16.mxu1 %v1718_v52 }
 0x145   :  { %945 = vmatpush1.bf16.msra.mxu0 %v1715_v53  ;;  %1534 = vmatpush3.bf16.msra.mxu1 %v1719_v54 }
 0x146   :  { %946 = vmatprep.subr.bf16.mxu0 %v1722_v55  ;;  %1535 = vmatprep.subr.bf16.mxu1 %v1723_v56 }
 0x149   :  { %947 = vmatpush1.bf16.msra.mxu0 %v1720_v57  ;;  %1536 = vmatpush3.bf16.msra.mxu1 %v1724_v58  ;;  %v367_v57 = vrot.slane %v362_v42, %v94_v60  ;;  %v371_v58 = vrot.slane %v362_v42, %v98_v62  ;;  %v1772_v60 = vld [vmem:[#allocation8 + $0x90] sm:$0xff]   ;;  %v1773_v62 = vld [vmem:[#allocation8 + $0x98] sm:$0xff]  }
 0x14a   :  { %948 = vmatprep.subr.bf16.mxu0 %v1727_v61  ;;  %1537 = vmatprep.subr.bf16.mxu1 %v1728_v0 }
 0x14d   :  { %949 = vmatpush1.bf16.msra.mxu0 %v1725_v1  ;;  %1538 = vmatpush3.bf16.msra.mxu1 %v1729_v2 }
 0x14e   :  { %950 = vmatprep.subr.bf16.mxu0 %v1732_v3  ;;  %1545 = vmatprep.subr.bf16.mxu1 %v1754_v19 }
 0x150   :  { %1051 = vmatmul.mubr.bf16.vlgmr.msra.gmra.mrb[8].mxu1 %v2022_v35 }
 0x151   :  { %951 = vmatpush1.bf16.msra.mxu0 %v1730_v4  ;;  %1546 = vmatpush3.bf16.msra.mxu1 %v1755_v20 }
 0x152   :  { %952 = vmatprep.subr.bf16.mxu0 %v1735_v5  ;;  %1547 = vmatprep.subr.bf16.mxu1 %v1756_v21 }
 0x155   :  { %953 = vmatpush1.bf16.msra.mxu0 %v1733_v6  ;;  %1548 = vmatpush3.bf16.msra.mxu1 %v1757_v22 }
 0x156   :  { %954 = vmatprep.subr.bf16.mxu0 %v1738_v7  ;;  %1549 = vmatprep.subr.bf16.mxu1 %v1758_v23  ;;  %v1476_v23 = vld [vmem:[%s2068_s6] ss:$0 sm:$0xff]  ;;  %s1870_s6 = scalar_lea.vmem %s1361_s13, 256 }
 0x157   :  { %p1871_p4 = scmp.ne.s32.totalorder %s1361_s13, %s1870_s6  ;;  %p1876_p6 = scmp.lt.s32.totalorder %s1870_s6, %s1870_s6 }
 0x159   :  { %955 = vmatpush1.bf16.msra.mxu0 %v1736_v8  ;;  %1550 = vmatpush3.bf16.msra.mxu1 %v1759_v24  ;;  %p1877_p7 = por %p1876_p6, %p1875_p5 }
 0x15a   :  { %956 = vmatprep.subr.bf16.mxu0 %v1741_v9  ;;  %1551 = vmatprep.subr.bf16.mxu1 %v1760_v25 }
 0x15b   :  { %p1878_p8 = pnand %p1877_p7, %p1871_p4 }
 0x15d   :  { %957 = vmatpush1.bf16.msra.mxu0 %v1739_v10  ;;  %1552 = vmatpush3.bf16.msra.mxu1 %v1761_v26 }
 0x15e   :  { %958 = vmatprep.subr.bf16.mxu0 %v1744_v11  ;;  %1553 = vmatprep.subr.bf16.mxu1 %v1762_v27 }
 0x161   :  { %959 = vmatpush1.bf16.msra.mxu0 %v1742_v12  ;;  %1554 = vmatpush3.bf16.msra.mxu1 %v1763_v28  ;;  %v1770_v12 = vld [vmem:[#allocation8 + $0x80] sm:$0xff]  }
 0x162   :  { %960 = vmatprep.subr.bf16.mxu0 %v1747_v13  ;;  %1555 = vmatprep.subr.bf16.mxu1 %v1764_v29  ;;  %v1774_v13 = vld [vmem:[#allocation8 + $0xa0] sm:$0xff]  }
 0x165   :  { %961 = vmatpush1.bf16.msra.mxu0 %v1745_v14  ;;  %1556 = vmatpush3.bf16.msra.mxu1 %v1765_v30  ;;  %v1775_v14 = vld [vmem:[#allocation8 + $0xa8] sm:$0xff]  }
 0x166   :  { %962 = vmatprep.subr.bf16.mxu0 %v1750_v15  ;;  %1557 = vmatprep.subr.bf16.mxu1 %v1766_v31  ;;  %v1776_v15 = vld [vmem:[#allocation8 + $0xb0] sm:$0xff]  }
 0x169   :  { %963 = vmatpush1.bf16.msra.mxu0 %v1748_v16  ;;  %1558 = vmatpush3.bf16.msra.mxu1 %v1767_v32  ;;  %v1777_v16 = vld [vmem:[#allocation8 + $0xb8] sm:$0xff]  }
 0x16a   :  { %964 = vmatprep.subr.bf16.mxu0 %v1753_v17  ;;  %1559 = vmatprep.subr.bf16.mxu1 %v1768_v33 }
 0x16d   :  { %965 = vmatpush1.bf16.msra.mxu0 %v1751_v18  ;;  %1560 = vmatpush3.bf16.msra.mxu1 %v1769_v34 }
 0x170   :  { %967 = vmatmul.mubr.bf16.vlgmr.msra.gmra.mrb[4].mxu0 %v2022_v35  ;;  %v1913_v35 = vmov 0.0  }
 0x171   :  { %1576 = vmatprep.subr.bf16.mxu1 %v1913_v35 }
 0x203   :  { %v1517_v36 = vpop.f32.mrb[4].mxu1 }
 0x204   :  { %v1518_v37 = vpop.f32.mrb[5].mxu1 }
 0x205   :  { %v1519_v38 = vadd.f32 %v1518_v37, %v1517_v36  ;;  %v1520_v39 = vpop.f32.mrb[6].mxu1 }
 0x206   :  { %v1521_v40 = vpop.f32.mrb[7].mxu1 }
 0x207   :  { %v1522_v41 = vadd.f32 %v1521_v40, %v1520_v39  ;;  %v1012_v46 = vadd.f32 %v1519_v38, %v375_v43 }
 0x209   :  { %v1015_v50 = vadd.f32 %v1522_v41, %v375_v43 }
 0x223   :  { %v1539_v44 = vpop.f32.mrb[8].mxu1 }
 0x224   :  { %v1540_v45 = vpop.f32.mrb[9].mxu1 }
 0x225   :  { %v1541_v47 = vadd.f32 %v1540_v45, %v1539_v44  ;;  %v1542_v48 = vpop.f32.mrb[10].mxu1 }
 0x226   :  { %v1543_v49 = vpop.f32.mrb[11].mxu1 }
 0x227   :  { %v1053_v51 = vadd.f32 %v1541_v47, %v1012_v46  ;;  %v1544_v52 = vadd.f32 %v1543_v49, %v1542_v48 }
 0x229   :  { %v1056_v53 = vadd.f32 %v1544_v52, %v1015_v50  ;;  %v1061_v54 = vmax.f32 %v1053_v51, 0.0 }
 0x22b   :  { %v1064_v55 = vmax.f32 %v1056_v53, 0.0 }
 0x22d   :  { %v1067_v56 = vpack.c.bf16 %v1064_v55, %v1061_v54 }
 0x243   :  { %v968_v63 = vpop.f32.mrb[4].mxu0 }
 0x244   :  { %v1596_v61 = vadd.f32 %v968_v63, %v367_v57  ;;  %v970_v0 = vpop.f32.mrb[5].mxu0 }
 0x245   :  { %v1597_v1 = vadd.f32 %v970_v0, %v371_v58  ;;  %v972_v2 = vpop.f32.mrb[6].mxu0 }
 0x246   :  { %v1598_v3 = vadd.f32 %v972_v2, %v367_v57  ;;  %v974_v4 = vpop.f32.mrb[7].mxu0  ;;  %v1059_v6 = vmax.f32 %v1596_v61, 0.0 }
 0x247   :  { %v1599_v5 = vadd.f32 %v974_v4, %v371_v58  ;;  %v1060_v8 = vmax.f32 %v1597_v1, 0.0 }
 0x248   :  { %v1062_v7 = vmax.f32 %v1598_v3, 0.0 }
 0x249   :  { %v1063_v9 = vmax.f32 %v1599_v5, 0.0 }
 0x24a   :  { %v1065_v10 = vpack.c.bf16 %v1062_v7, %v1059_v6 }
 0x24b   :  { %v1066_v11 = vpack.c.bf16 %v1063_v9, %v1060_v8 }
 0x24d   :  { %1299 = vmatprep.mubr.bf16.mxu1 %v1066_v11 }
 0x24e   :  { %1300 = vmatmul.mubr.bf16.vlgmr.msra.gmra.mrb[12].mxu1 %v1065_v10 }
 0x24f   :  { %1577 = vmatpush3.bf16.msra.mxu1 %v1770_v12  ;;  %1592 = vmatprep.mubr.msk.bf16.mxu1 %vm1914_vm1, %v1913_v35 }
 0x250   :  { %1578 = vmatprep.subr.bf16.mxu1 %v1913_v35 }
 0x253   :  { %1579 = vmatpush3.bf16.msra.mxu1 %v1771_v59 }
 0x254   :  { %1580 = vmatprep.subr.bf16.mxu1 %v1913_v35 }
 0x257   :  { %1581 = vmatpush3.bf16.msra.mxu1 %v1772_v60 }
 0x258   :  { %1582 = vmatprep.subr.bf16.mxu1 %v1913_v35 }
 0x25b   :  { %1583 = vmatpush3.bf16.msra.mxu1 %v1773_v62 }
 0x25c   :  { %1584 = vmatprep.subr.bf16.mxu1 %v1913_v35 }
 0x25f   :  { %1585 = vmatpush3.bf16.msra.mxu1 %v1774_v13 }
 0x260   :  { %1586 = vmatprep.subr.bf16.mxu1 %v1913_v35 }
 0x263   :  { %1587 = vmatpush3.bf16.msra.mxu1 %v1775_v14 }
 0x264   :  { %1588 = vmatprep.subr.bf16.mxu1 %v1913_v35 }
 0x267   :  { %1589 = vmatpush3.bf16.msra.mxu1 %v1776_v15 }
 0x268   :  { %1590 = vmatprep.subr.bf16.mxu1 %v1913_v35 }
 0x26b   :  { %1591 = vmatpush3.bf16.msra.mxu1 %v1777_v16 }
 0x26e   :  { %1593 = vmatmul.mubr.bf16.vlgmr.msra.gmra.mrb[16].mxu1 %v1067_v56 }
 0x321   :  { %v1561_v17 = vpop.f32.mrb[12].mxu1 }
 0x322   :  { %v1562_v18 = vpop.f32.mrb[13].mxu1 }
 0x323   :  { %v1563_v19 = vadd.f32 %v1562_v18, %v1561_v17  ;;  %v1564_v20 = vpop.f32.mrb[14].mxu1 }
 0x324   :  { %v1565_v21 = vpop.f32.mrb[15].mxu1 }
 0x325   :  { %v1566_v22 = vadd.f32 %v1565_v21, %v1564_v20  ;;  %v1302_v24 = vadd.f32 %v1563_v19, %v1476_v23 }
 0x327   :  { %v1305_v28 = vadd.f32 %v1566_v22, %v1476_v23 }
 0x341   :  { %v1342_v25 = vpop.f32.mrb[16].mxu1 }
 0x342   :  { %v1343_v26 = vadd.f32 %v1342_v25, %v1302_v24  ;;  %v1594_v27 = vpop.f32.mrb[17].mxu1 }
 0x343   :  { %v1345_v29 = vpop.f32.mrb[18].mxu1 }
 0x344   :  { %1778 = vtanh.f32 %v1343_v26  ;;  %v1346_v30 = vadd.f32 %v1345_v29, %v1305_v28  ;;  %v1595_v31 = vpop.f32.mrb[19].mxu1 }
 0x346   :  { %1780 = vtanh.f32 %v1346_v30 }
 0x34e   :  { %v1779_v32 = vpop.eup %1778 }
 0x34f   :  { %v1351_v33 = vmul.f32 2.0, %v1779_v32 }
 0x350   :  { %v1781_v34 = vpop.eup %1780 }
 0x351   :  { %1353 = vst [vmem:[#allocation10] sm:$0xff] %v1351_v33  ;;  %v1352_v35 = vmul.f32 2.0, %v1781_v34 }
 0x353   :  { %1354 = vst [vmem:[#allocation10 + $0x8] sm:$0xff] %v1352_v35 }
 0x354   :  { %1881 = shalt.err (!%p1878_p8)
}
 0x355   :  { %s1882_s15 = scalar_lea.hbm %s2069_s7, 256 }
 0x356   :  { %p1883_p9 = scmp.ne.s32.totalorder %s2069_s7, %s1882_s15  ;;  %p1886_p10 = scmp.lt.u32.totalorder %s1882_s15, %s2069_s7 }
 0x358   :  { %p1888_p11 = pnand %p1886_p10, %p1883_p9 }
 0x35a   :  { %1891 = shalt.err (!%p1888_p11)
}
 0x35b   :  { %1366 = dma.vmem_to_hbm [thread:$0]  %s1361_s13, 256, %s2069_s7, [#allocation4], %s1904_s1, %s1904_s1, %s1905_s25  }
 0x35c   :  { %1898 = dma.done.wait [#allocation4], 256  }
 0x35d   :  { %1899 = vsyncadd [#allocation4], 4294967040 }
 0x35e   :  { %1370 = vsyncpa [#allocation3], 1 }
 0x35f   :  { %1371 = vsyncpa [#allocation6], 1 }
 0x360   :  { %1372 = vsyncpa [#allocation9], 1 }
 0x361   :  { %1373 = vsyncpa [#allocation4], 1 }

</bundles_post_ra>
